<compile_context>
chip_gen: v7x
topology: tpu7x:2x2x1
jax: 0.10.0
libtpu: 0.0.40
codegen_flags: <defaults>
</compile_context>

<pallas_src>
import functools
import math

import jax
import jax.numpy as jnp
from jax.experimental import pallas as pl
from jax.experimental.pallas import tpu as pltpu


def _time_emb_kernel(t_ref, o_ref, *, half_dim, scale):
    # t_ref: (1, TB) lane-major timesteps block ; o_ref: (TB, dim) f32 output.
    tb, dim = o_ref.shape
    # Lane-major row -> (TB, 1) column (small relayout; hidden under the
    # VALU-bound sin work below).
    t_col = t_ref[...].reshape(tb, 1)

    # Per-output-column frequency and phase:
    #   column j <  half_dim -> sin(t * f_j)
    #   column j >= half_dim -> cos(t * f_{j-half_dim}) == sin(t * f + pi/2)
    j = jax.lax.broadcasted_iota(jnp.int32, (1, dim), 1)          # (1, dim)
    cos_half = j >= half_dim
    k = jnp.where(cos_half, j - half_dim, j).astype(jnp.float32)
    freqs = jnp.exp(k * jnp.float32(-scale))                      # EUP exp (free slot)
    phase = jnp.where(cos_half, jnp.float32(math.pi / 2.0), jnp.float32(0.0))

    ang = t_col * freqs + phase                                   # (TB, dim) VPU broadcast
    o_ref[...] = jnp.sin(ang)                                     # one full-width store


def _pick_batch_tile(B, dim, target_block_bytes):
    # Bytes per row: output row + sublane-padded input row of the (1, tb) block.
    row_bytes = 4 * dim + 4 * 8
    tb = max(target_block_bytes // row_bytes, 128)
    if B >= 256:
        # Guarantee >= 2 grid steps so both v7x TensorCores get work
        # (harmless extra step on single-TC v5e/v6e).
        tb = min(tb, pl.cdiv(B, 2))
    if tb >= B:
        return B                      # single block: block dims == full dims
    return ((tb + 127) // 128) * 128  # lane-dense input block needs tb % 128 == 0


def sinusoidal_time_embedding(timesteps: jax.Array, dim: int,
                              *, target_block_bytes: int = 2 << 20) -> jax.Array:
    """timesteps: (B,) array. Returns (B, dim) f32: cat([sin(t*f), cos(t*f)], -1)."""
    assert dim % 2 == 0, "dim must be even (torch.cat((sin, cos), dim=1) layout)"
    half_dim = dim // 2
    assert half_dim > 1, "dim must be >= 4 (half_dim - 1 divides the scale)"
    scale = math.log(10000.0) / (half_dim - 1)

    t_row = timesteps.astype(jnp.float32).reshape(1, -1)          # lane-major (1, B)
    B = t_row.shape[1]

    tb = _pick_batch_tile(B, dim, target_block_bytes)
    grid = (pl.cdiv(B, tb),)

    kernel = functools.partial(_time_emb_kernel, half_dim=half_dim, scale=scale)

    return pl.pallas_call(
        kernel,
        out_shape=jax.ShapeDtypeStruct((B, dim), jnp.float32),
        grid=grid,
        in_specs=[pl.BlockSpec((1, tb), lambda i: (0, i))],
        out_specs=pl.BlockSpec((tb, dim), lambda i: (i, 0)),
        compiler_params=pltpu.CompilerParams(
            dimension_semantics=("parallel",)),
    )(t_row)


def _reference(timesteps, dim):
    half_dim = dim // 2
    scale = math.log(10000.0) / (half_dim - 1)
    freqs = jnp.exp(jnp.arange(half_dim, dtype=jnp.float32) * -scale)
    ang = timesteps.astype(jnp.float32)[:, None] * freqs[None, :]
    return jnp.concatenate([jnp.sin(ang), jnp.cos(ang)], axis=1)


if __name__ == "__main__":
    key = jax.random.PRNGKey(0)

    # Small demo shape (single-block path).
    batch, dim = 8, 32
    timesteps = jax.random.randint(key, (batch,), 0, 1000).astype(jnp.float32)
    out = jax.block_until_ready(sinusoidal_time_embedding(timesteps, dim))
    ref = _reference(timesteps, dim)
    assert out.shape == (batch, dim), out.shape
    assert jnp.allclose(out, ref, atol=1e-4, rtol=1e-5), "mismatch vs reference (small)"

    # Gridded path: exercises lane-dense batch tiling + >=2 parallel grid steps.
    batch2, dim2 = 512, 64
    key2 = jax.random.fold_in(key, 1)
    timesteps2 = jax.random.randint(key2, (batch2,), 0, 1000).astype(jnp.float32)
    out2 = jax.block_until_ready(sinusoidal_time_embedding(timesteps2, dim2))
    ref2 = _reference(timesteps2, dim2)
    assert out2.shape == (batch2, dim2), out2.shape
    assert jnp.allclose(out2, ref2, atol=1e-4, rtol=1e-5), "mismatch vs reference (grid)"

    print("KERNEL_OK")
</pallas_src>

<mosaic_0001>
module attributes {stable_mosaic.version = 11 : i64} {
  func.func @_time_emb_kernel(%arg0: i32, %arg1: memref<1x8xf32, #tpu.memory_space<vmem>>, %arg2: memref<8x32xf32, #tpu.memory_space<vmem>>) attributes {dimension_semantics = [#tpu.dimension_semantics<parallel>], iteration_bounds = array<i64: 1>, scalar_prefetch = 0 : i64, scratch_operands = 0 : i64, tpu.core_type = #tpu.core_type<tc>, window_params = [{transform_indices = @transform_0, window_bounds = array<i64: 1, 8>}, {transform_indices = @transform_1, window_bounds = array<i64: 8, 32>}]} {
    %c0 = arith.constant 0 : index
    %c0_0 = arith.constant 0 : index
    %0 = vector.load %arg1[%c0, %c0_0] : memref<1x8xf32, #tpu.memory_space<vmem>>, vector<1x8xf32>
    %1 = vector.shape_cast %0 : vector<1x8xf32> to vector<8x1xf32>
    %2 = tpu.iota {dimensions = array<i32: 1>} : vector<1x32xi32>
    %c16_i32 = arith.constant 16 : i32
    %3 = vector.broadcast %c16_i32 : i32 to vector<1x32xi32>
    %4 = arith.cmpi sge, %2, %3 : vector<1x32xi32>
    %c16_i32_1 = arith.constant 16 : i32
    %5 = vector.broadcast %c16_i32_1 : i32 to vector<1x32xi32>
    %6 = arith.subi %2, %5 : vector<1x32xi32>
    %7 = arith.select %4, %6, %2 : vector<1x32xi1>, vector<1x32xi32>
    %8 = arith.sitofp %7 : vector<1x32xi32> to vector<1x32xf32>
    %cst = arith.constant -0.614022672 : f32
    %9 = vector.broadcast %cst : f32 to vector<1x32xf32>
    %10 = arith.mulf %8, %9 : vector<1x32xf32>
    %11 = math.exp %10 : vector<1x32xf32>
    %cst_2 = arith.constant 1.57079637 : f32
    %cst_3 = arith.constant 0.000000e+00 : f32
    %12 = vector.broadcast %cst_2 : f32 to vector<1x32xf32>
    %13 = vector.broadcast %cst_3 : f32 to vector<1x32xf32>
    %14 = arith.select %4, %12, %13 : vector<1x32xi1>, vector<1x32xf32>
    %15 = vector.broadcast %1 : vector<8x1xf32> to vector<8x32xf32>
    %16 = vector.broadcast %11 : vector<1x32xf32> to vector<8x32xf32>
    %17 = arith.mulf %15, %16 : vector<8x32xf32>
    %18 = vector.broadcast %14 : vector<1x32xf32> to vector<8x32xf32>
    %19 = arith.addf %17, %18 : vector<8x32xf32>
    %20 = math.sin %19 : vector<8x32xf32>
    %c0_4 = arith.constant 0 : index
    %c0_5 = arith.constant 0 : index
    %21 = vector.load %arg2[%c0_4, %c0_5] : memref<8x32xf32, #tpu.memory_space<vmem>>, vector<8x32xf32>
    tpu.vector_store %arg2[%c0_4, %c0_5], %20 {strides = array<i32>} : memref<8x32xf32, #tpu.memory_space<vmem>>, vector<8x32xf32>,
    return
  }
  func.func @transform_0(%arg0: i32) -> (i32, i32) {
    %c0_i32 = arith.constant 0 : i32
    %c0_i32_0 = arith.constant 0 : i32
    return %c0_i32, %arg0 : i32, i32
  }
  func.func @transform_1(%arg0: i32) -> (i32, i32) {
    %c0_i32 = arith.constant 0 : i32
    %c0_i32_0 = arith.constant 0 : i32
    return %arg0, %c0_i32 : i32, i32
  }
}

</mosaic_0001>

<bundles_post_ra>
// kernel: tpu_custom_call.1
= control target key start
LH: loop header
LB: loop body
LE: loop exit
PB: predicated region body
PF: predicated region fallthrough
CT: control target
= control target key end

     0   :  { %6 = vsyncpa [#allocation3], 0  ;;  %s299_s0 = inlined_call_operand.hbm [shape: f32[1,8], index: 0, kind: input, shape index: {}]   ;;  %s300_s1 = inlined_call_operand.hbm [shape: f32[8,32], index: 1, kind: output, shape index: {}]  }
   0x1   :  { %7 = vsyncpa [#allocation4], 0  ;;  %s235_s6 = smov [#allocation2]   ;;  %s187_s10 = scalar_lea.hbm %s299_s0, 16 }
   0x2   :  { %s14_s7 = sshll.u32 %s235_s6, 4  ;;  %p188_p0 = scmp.ne.s32.totalorder %s299_s0, %s187_s10  ;;  %s15_s7 = int_to_ptr.vmem [resolvable:$true] %s14_s7 }
   0x3   :  { %p191_p1 = scmp.lt.u32.totalorder %s187_s10, %s299_s0 }
   0x5   :  { %p193_p2 = pnand %p191_p1, %p188_p0 }
   0x7   :  { %196 = shalt.err (!%p193_p2)
}
   0x8   :  { %s197_s15 = scalar_lea.vmem %s15_s7, 16  ;;  %s201_s16 = scalar_lea.vmem %s15_s7, 32 }
   0x9   :  { %p198_p3 = scmp.ne.s32.totalorder %s15_s7, %s197_s15  ;;  %p202_p4 = scmp.lt.s32.totalorder %s15_s7, %s15_s7 }
   0xa   :  { %p203_p5 = scmp.lt.s32.totalorder %s201_s16, %s197_s15 }
   0xc   :  { %p204_p6 = por %p203_p5, %p202_p4 }
   0xe   :  { %p205_p7 = pnand %p204_p6, %p198_p3 }
  0x10   :  { %208 = shalt.err (!%p205_p7)
}
  0x11   :  { %17 = dma.hbm_to_vmem [thread:$0]  %s299_s0, 16, %s15_s7, [#allocation3]  }
  0x12   :  { %231 = dma.done.wait [#allocation3], 16  }
  0x13   :  { %232 = vsyncadd [#allocation3], 4294967280  ;;  %v162_v0 = vld [vmem:[#allocation2] ss:$0 sm:$0xff]  ;;  %v29_v1 = vlaneseq  ;;  %v236_v10 = vmov 0.0   ;;  %s243_s0 = smov [#allocation5]  }
  0x14   :  { %27 = vbcast.lane.b32.xlu0 %v162_v0, 256  ;;  %v237_v24 = vmov 683565275   ;;  %v238_v26 = vmov 2475754826   ;;  %s153_s19 = sshll.u32 %s243_s0, 4  ;;  %s154_s19 = int_to_ptr.vmem [resolvable:$true] %s153_s19 }
  0x15   :  { %v30_v2 = vand.u32 127, %v29_v1  ;;  %v239_v29 = vmov 2131351028   ;;  %v240_v32 = vmov 2102212464   ;;  %vm145_vm13 = vcmask 261120   ;;  %p214_p9 = scmp.lt.s32.totalorder %s154_s19, %s154_s19 }
  0x16   :  { %v241_v35 = vmov 920167782   ;;  %v242_v38 = vmov 1326507024   ;;  %s209_s20 = scalar_lea.vmem %s154_s19, 128 }
  0x17   :  { %v163_v3 = vadd.s32 4294967280, %v30_v2  ;;  %vm31_vm0 = vcmp.ge.s32.totalorder %v30_v2, 16  ;;  %p210_p8 = scmp.ne.s32.totalorder %s154_s19, %s209_s20  ;;  %p215_p10 = scmp.lt.s32.totalorder %s209_s20, %s209_s20 }
  0x18   :  { %v38_v11 = vsel %vm31_vm0, 1.5707964, %v236_v10 }
  0x19   :  { %v33_v4 = vsel %vm31_vm0, %v163_v3, %v30_v2  ;;  %p216_p11 = por %p215_p10, %p214_p9 }
  0x1a   :  { %v34_v5 = vcvt.s32.f32 %v33_v4 }
  0x1b   :  { %p217_p12 = pnand %p216_p11, %p210_p8 }
  0x1c   :  { %v35_v6 = vmul.f32 -0.6140227, %v34_v5 }
  0x1e   :  { %v36_v7 = vmul.f32 1.442695, %v35_v6 }
  0x20   :  { %181 = vpow2.f32 %v36_v7 }
  0x2a   :  { %v182_v8 = vpop.eup %181 }
  0x86   :  { %v28_v9 = vpop.permute.xlu0 %27 }
  0x87   :  { %v39_v12 = vmul.f32 %v182_v8, %v28_v9 }
  0x89   :  { %v266_v13 = vadd.f32 %v39_v12, %v38_v11 }
  0x8b   :  { %v44_v14 = vand.u32 2139095040, %v266_v13  ;;  %v41_v18 = vand.u32 2147483647, %v266_v13  ;;  %vm43_vm8 = vcmp.lt.s32.totalorder %v266_v13, 0  ;;  %vm133_vm14 = vweird.f32 %v266_v13 }
  0x8d   :  { %v45_v15 = vshrl.u32 %v44_v14, 23  ;;  %v48_v21 = vand.u32 8388607, %v41_v18  ;;  %vm42_vm9 = vcmp.le.f32.partialorder %v41_v18, 0.7853982 }
  0x8f   :  { %v164_v16 = vadd.s32 4294967169, %v45_v15  ;;  %v49_v40 = vor.u32 8388608, %v48_v21 }
  0x91   :  { %v51_v17 = vadd.s32 1, %v164_v16  ;;  %v89_v54 = vshll.u32 %v49_v40, 8 }
  0x93   :  { %vm52_vm1 = vcmp.gt.s32.totalorder %v51_v17, 0 }
  0x94   :  { %v53_v19 = vsel %vm52_vm1, %v51_v17, 0 }
  0x95   :  { %v55_v20 = vand.u32 31, %v53_v19  ;;  %v54_v23 = vshrl.u32 %v53_v19, 5 }
  0x97   :  { %v56_v22 = vsub.s32 32, %v55_v20  ;;  %v58_v25 = vshll.u32 %v237_v24, %v55_v20  ;;  %v61_v27 = vshll.u32 %v238_v26, %v55_v20  ;;  %v64_v31 = vshll.u32 %v239_v29, %v55_v20 }
  0x98   :  { %v67_v34 = vshll.u32 %v240_v32, %v55_v20  ;;  %v70_v37 = vshll.u32 %v241_v35, %v55_v20  ;;  %vm73_vm2 = vcmp.lt.s32.totalorder %v54_v23, 1  ;;  %vm76_vm3 = vcmp.lt.s32.totalorder %v54_v23, 4 }
  0x99   :  { %v59_v28 = vshrl.u32 %v238_v26, %v56_v22  ;;  %v62_v30 = vshrl.u32 %v239_v29, %v56_v22  ;;  %v65_v33 = vshrl.u32 %v240_v32, %v56_v22  ;;  %v68_v36 = vshrl.u32 %v241_v35, %v56_v22 }
  0x9a   :  { %v71_v39 = vshrl.u32 %v242_v38, %v56_v22  ;;  %v57_v49 = vshrl.u32 %v237_v24, %v56_v22  ;;  %vm75_vm4 = vcmp.lt.s32.totalorder %v54_v23, 3  ;;  %vm74_vm5 = vcmp.lt.s32.totalorder %v54_v23, 2 }
  0x9b   :  { %v60_v41 = vor.u32 %v59_v28, %v58_v25  ;;  %v63_v42 = vor.u32 %v62_v30, %v61_v27  ;;  %v66_v43 = vor.u32 %v65_v33, %v64_v31  ;;  %v69_v44 = vor.u32 %v68_v36, %v67_v34 }
  0x9c   :  { %v72_v45 = vor.u32 %v71_v39, %v70_v37 }
  0x9d   :  { %v78_v46 = vsel %vm76_vm3, %v66_v43, 2102212464  ;;  %v81_v47 = vsel %vm73_vm2, %v60_v41, %v63_v42  ;;  %v85_v48 = vsel %vm73_vm2, %v63_v42, %v66_v43  ;;  %v82_v50 = vsel %vm76_vm3, %v69_v44, 920167782 }
  0x9e   :  { %v86_v51 = vsel %vm76_vm3, %v72_v45, 1326507024  ;;  %v83_v52 = vsel %vm75_vm4, %v66_v43, %v82_v50  ;;  %v77_v55 = vsel %vm73_vm2, %v57_v49, %v60_v41  ;;  %v79_v56 = vsel %vm75_vm4, %v63_v42, %v78_v46 }
  0x9f   :  { %v87_v53 = vsel %vm75_vm4, %v69_v44, %v86_v51  ;;  %v84_v57 = vsel %vm74_vm5, %v81_v47, %v83_v52  ;;  %v80_v63 = vsel %vm74_vm5, %v77_v55, %v79_v56 }
  0xa0   :  { %v88_v58 = vsel %vm74_vm5, %v85_v48, %v87_v53  ;;  %v275_v61 = vmul.u32.u64.low %v89_v54, %v84_v57  ;;  %v276_v62 = vmul.u32.u64.high %v89_v54, %v84_v57, %v275_v61  ;;  %v96_v1 = vmul.u32 %v89_v54, %v80_v63 }
  0xa1   :  { %v272_v59 = vmul.u32.u64.low %v89_v54, %v88_v58  ;;  %v273_v60 = vmul.u32.u64.high %v89_v54, %v88_v58, %v272_v59 }
  0xa2   :  { %v99_v0 = vadd.s32 1, %v276_v62 }
  0xa3   :  { %vm98_vm6 = vc.u32 %v273_v60, %v275_v61  ;;  %v97_v14 = vadd.s32 %v275_v61, %v273_v60 }
  0xa4   :  { %v100_v2 = vsel %vm98_vm6, %v99_v0, %v276_v62 }
  0xa5   :  { %v101_v3 = vadd.s32 %v100_v2, %v96_v1 }
  0xa7   :  { %v102_v4 = vadd.s32 536870912, %v101_v3 }
  0xa9   :  { %v103_v5 = vshrl.u32 %v102_v4, 30 }
  0xab   :  { %v104_v6 = vshll.u32 %v103_v5, 30  ;;  %v127_v27 = vsub.s32 4, %v103_v5 }
  0xad   :  { %v105_v7 = vsub.s32 %v101_v3, %v104_v6  ;;  %v128_v30 = vsel %vm43_vm8, %v127_v27, %v103_v5 }
  0xae   :  { %v130_v32 = vsel %vm42_vm9, 0, %v128_v30 }
  0xaf   :  { %v107_v8 = vsub.s32 0, %v105_v7  ;;  %v134_v33 = vadd.s32 3, %v130_v32 }
  0xb1   :  { %v165_v9 = vmin.u32 %v107_v8, %v105_v7  ;;  %v135_v34 = vand.u32 3, %v134_v33 }
  0xb3   :  { %v109_v10 = vclz %v165_v9  ;;  %vm140_vm10 = vcmp.eq.s32.totalorder %v135_v34, 2  ;;  %vm137_vm11 = vcmp.eq.s32.totalorder %v135_v34, 0  ;;  %vm136_vm12 = vcmp.lt.s32.totalorder %v135_v34, 2 }
  0xb5   :  { %v166_v11 = vadd.s32 4294967294, %v109_v10 }
  0xb7   :  { %vm167_vm7 = vcmp.lt.s32.totalorder %v166_v11, 0 }
  0xb8   :  { %v112_v12 = vsel %vm167_vm7, 0, %v166_v11 }
  0xb9   :  { %v113_v15 = vsub.s32 32, %v112_v12  ;;  %v117_v16 = vsub.s32 4294967266, %v112_v12  ;;  %v114_v17 = vshll.u32 %v105_v7, %v112_v12 }
  0xbb   :  { %v115_v19 = vshrl.u32 %v97_v14, %v113_v15  ;;  %v118_v20 = vadd.s32 127, %v117_v16 }
  0xbd   :  { %v116_v21 = vor.u32 %v115_v19, %v114_v17  ;;  %v119_v22 = vshll.u32 %v118_v20, 23 }
  0xbf   :  { %v120_v23 = vor.u32 4788187, %v119_v22  ;;  %v123_v25 = vcvt.s32.f32 %v116_v21 }
  0xc1   :  { %v121_v24 = vand.u32 2147483647, %v120_v23 }
  0xc3   :  { %v124_v26 = vmul.f32 %v123_v25, %v121_v24 }
  0xc5   :  { %v125_v28 = vxor.u32 2147483648, %v124_v26 }
  0xc7   :  { %v126_v29 = vsel %vm43_vm8, %v125_v28, %v124_v26 }
  0xc8   :  { %v129_v31 = vsel %vm42_vm9, %v266_v13, %v126_v29 }
  0xc9   :  { %183 = vcosq.f32 %v129_v31 }
  0xca   :  { %185 = vsinq.f32 %v129_v31 }
  0xd3   :  { %v184_v35 = vpop.eup %183 }
  0xd4   :  { %v186_v36 = vpop.eup %185  ;;  %v141_v37 = vxor.u32 2147483648, %v184_v35 }
  0xd5   :  { %v138_v38 = vxor.u32 2147483648, %v186_v36 }
  0xd6   :  { %v142_v39 = vsel %vm140_vm10, %v141_v37, %v186_v36 }
  0xd7   :  { %v139_v40 = vsel %vm137_vm11, %v184_v35, %v138_v38 }
  0xd8   :  { %v143_v18 = vsel %vm136_vm12, %v139_v40, %v142_v39 }
  0xd9   :  { %v144_v41 = vsel %vm133_vm14, nan, %v143_v18 }
  0xda   :  { %146 = vst.msk [vmem:[#allocation5] sm:$0xff] %vm145_vm13, %v144_v41 }
  0xdb   :  { %220 = shalt.err (!%p217_p12)
}
  0xdc   :  { %s221_s23 = scalar_lea.hbm %s300_s1, 128 }
  0xdd   :  { %p222_p13 = scmp.ne.s32.totalorder %s300_s1, %s221_s23  ;;  %p225_p0 = scmp.lt.u32.totalorder %s221_s23, %s300_s1 }
  0xdf   :  { %p227_p1 = pnand %p225_p0, %p222_p13 }
  0xe1   :  { %230 = shalt.err (!%p227_p1)
}
  0xe2   :  { %156 = dma.vmem_to_hbm [thread:$0]  %s154_s19, 128, %s300_s1, [#allocation4]  }
  0xe3   :  { %233 = dma.done.wait [#allocation4], 128  }
  0xe4   :  { %234 = vsyncadd [#allocation4], 4294967168 }
  0xe5   :  { %160 = vsyncpa [#allocation3], 1 }
  0xe6   :  { %161 = vsyncpa [#allocation4], 1 }

</bundles_post_ra>
